<compile_context>
chip_gen: v6e
topology: v6e:2x2x1
jax: 0.10.0
libtpu: 0.0.40
codegen_flags: <defaults>
</compile_context>

<pallas_src>
import jax
import jax.numpy as jnp
from jax import lax
from jax.experimental import pallas as pl
from jax.experimental.pallas import tpu as pltpu

# ---- model dims (small, consistent with the module) ----
B = 2            # batch
S = 8            # sequence length
D = 32           # num_hiddens == key/query/value size == ffn_num_input == norm_shape
F = 64           # ffn_num_hiddens
NUM_HEADS = 4
HEAD_DIM = D // NUM_HEADS
N = B * S        # folded batch*seq
LN_EPS = 1e-5    # PyTorch LayerNorm default
NEG_INF = -1e6   # Python float (NOT a jnp array -> no captured constant)

assert S & (S - 1) == 0, "S must be a power of two for shift-based index decode"
LOG2_S = S.bit_length() - 1


def encoder_block_kernel(vl_ref,                       # scalar prefetch: valid_lens (B,) int32 in SMEM
                         x_ref, xt_ref, a_ref, m_ref,
                         w1_ref, w2_ref, vec_ref,
                         out_ref):
    xf = x_ref[...]                                    # (N, D)

    # One hoisted broadcast of X / X^T to the head batch dim; reused below.
    xb = jnp.broadcast_to(xf, (NUM_HEADS, N, D))       # (NH, N, D)
    xtb = jnp.broadcast_to(xt_ref[...], (NUM_HEADS, D, N))  # (NH, D, N)

    # --- attention scores: scores_h = X @ A_h @ X^T (scale folded into A_h) ---
    xa = jnp.einsum('hnk,hkl->hnl', xb, a_ref[...],
                    preferred_element_type=jnp.float32)          # (NH, N, D)
    scores = jnp.einsum('hnl,hlm->hnm', xa, xtb,
                        preferred_element_type=jnp.float32)      # (NH, N, N)

    # --- head-invariant mask at (1, N, N): same-batch AND key < valid_len ----
    shp = (1, N, N)
    row_idx = lax.broadcasted_iota(jnp.int32, shp, 1)
    col_idx = lax.broadcasted_iota(jnp.int32, shp, 2)
    row_b = row_idx >> LOG2_S                          # batch of query row
    col_b = col_idx >> LOG2_S                          # batch of key column
    col_s = col_idx & (S - 1)                          # key position within its batch
    vl_bcast = jnp.zeros(shp, jnp.int32)
    for b in range(B):                                 # static unroll: B scalar selects
        vl_bcast = jnp.where(col_b == b, vl_ref[b], vl_bcast)
    mask = (row_b == col_b) & (col_s < vl_bcast)
    scores = jnp.where(mask, scores, NEG_INF)          # mask broadcasts over heads

    # --- masked softmax (one exp / max / sum for all heads & batches) --------
    mx = jnp.max(scores, axis=-1, keepdims=True)
    p = jnp.exp(scores - mx)                           # masked entries -> exactly 0
    denom = jnp.sum(p, axis=-1, keepdims=True)
    p = p * pl.reciprocal(denom, approx=True)          # EUP; approx=False is exact fallback

    # --- output projection: o = sum_h P_h @ (X @ M_h) ------------------------
    xm = jnp.einsum('hnk,hkl->hnl', xb, m_ref[...],
                    preferred_element_type=jnp.float32)          # (NH, N, D)
    o = jnp.sum(jnp.einsum('hnm,hml->hnl', p, xm,
                           preferred_element_type=jnp.float32), axis=0)   # (N, D)

    # --- unpack the packed bias / LayerNorm parameter slab -------------------
    b1 = vec_ref[0]                                    # (F,)
    b2 = vec_ref[1, :D]                                # (D,)
    g1 = vec_ref[2, :D]
    be1 = vec_ref[3, :D]
    g2 = vec_ref[4, :D]
    be2 = vec_ref[5, :D]

    # --- AddNorm 1 ------------------------------------------------------------
    y = o + xf
    mu = jnp.mean(y, axis=-1, keepdims=True)
    var = jnp.mean((y - mu) ** 2, axis=-1, keepdims=True)
    y1 = (y - mu) * lax.rsqrt(var + LN_EPS) * g1 + be1

    # --- PositionWiseFFN -------------------------------------------------------
    h1 = jnp.maximum(
        jnp.dot(y1, w1_ref[...], preferred_element_type=jnp.float32) + b1, 0.0)
    f = jnp.dot(h1, w2_ref[...], preferred_element_type=jnp.float32) + b2

    # --- AddNorm 2 -------------------------------------------------------------
    z = f + y1
    mu2 = jnp.mean(z, axis=-1, keepdims=True)
    var2 = jnp.mean((z - mu2) ** 2, axis=-1, keepdims=True)
    out = (z - mu2) * lax.rsqrt(var2 + LN_EPS) * g2 + be2

    out_ref[...] = out.astype(out_ref.dtype)


def encoder_block(x, valid_lens, params):
    wq, wo, w1, b1, w2, b2, g1, be1, g2, be2 = params

    # Head-major weight views + algebraic folds (plain XLA ops outside the
    # kernel on 32x32 weights -> effectively free).  Softmax scale folded in.
    wq_h = wq.reshape(D, NUM_HEADS, HEAD_DIM).transpose(1, 0, 2)   # (NH, D, HD)
    wo_h = wo.reshape(NUM_HEADS, HEAD_DIM, D)                      # (NH, HD, D)
    scale = 1.0 / (HEAD_DIM ** 0.5)
    a_r = jnp.einsum('hkd,hld->hkl', wq_h, wq_h) * scale           # (NH, D, D)
    m_r = jnp.einsum('hkd,hdo->hko', wq_h, wo_h)                   # (NH, D, D)

    x_flat = x.reshape(N, D)
    xt = x_flat.T                                                  # (D, N)

    # Pack the six tiny bias / LN vectors into one slab -> one DMA, one tile.
    vec = jnp.zeros((8, F), jnp.float32)
    vec = vec.at[0, :F].set(b1.reshape(F))
    vec = vec.at[1, :D].set(b2.reshape(D))
    vec = vec.at[2, :D].set(g1.reshape(D))
    vec = vec.at[3, :D].set(be1.reshape(D))
    vec = vec.at[4, :D].set(g2.reshape(D))
    vec = vec.at[5, :D].set(be2.reshape(D))

    def full(shape):
        nd = len(shape)
        return pl.BlockSpec(shape, lambda i, vl, nd=nd: (0,) * nd)

    grid_spec = pltpu.PrefetchScalarGridSpec(
        num_scalar_prefetch=1,
        grid=(1,),                               # whole batch in one pipeline step
        in_specs=[
            full((N, D)),                        # X  (folded)
            full((D, N)),                        # X^T
            full((NUM_HEADS, D, D)),             # A_h  (scale folded)
            full((NUM_HEADS, D, D)),             # M_h
            full((D, F)),                        # W1
            full((F, D)),                        # W2
            full((8, F)),                        # packed b1,b2,g1,be1,g2,be2
        ],
        out_specs=pl.BlockSpec((N, D), lambda i, vl: (0, 0)),
    )

    out_flat = pl.pallas_call(
        encoder_block_kernel,
        out_shape=jax.ShapeDtypeStruct((N, D), jnp.float32),
        grid_spec=grid_spec,
        compiler_params=pltpu.CompilerParams(
            dimension_semantics=("arbitrary",)),
    )(valid_lens, x_flat, xt, a_r, m_r, w1, w2, vec)

    return out_flat.reshape(B, S, D)


def encoder_block_ref(x, valid_lens, params):
    """Pure-JAX reference for verification (standard per-batch formulation)."""
    wq, wo, w1, b1, w2, b2, g1, be1, g2, be2 = params
    q = x @ wq                                              # (B, S, D); q == k == v
    qh = q.reshape(B, S, NUM_HEADS, HEAD_DIM).transpose(0, 2, 1, 3)   # (B, nh, S, hd)
    scores = jnp.einsum('bhqd,bhkd->bhqk', qh, qh) / jnp.sqrt(HEAD_DIM)
    key_idx = jnp.arange(S)
    mask = key_idx[None, None, None, :] < valid_lens[:, None, None, None]
    scores = jnp.where(mask, scores, -1e6)
    p = jax.nn.softmax(scores, axis=-1)
    oh = jnp.einsum('bhqk,bhkd->bhqd', p, qh)
    attn = oh.transpose(0, 2, 1, 3).reshape(B, S, D)
    o = attn @ wo

    def ln(v, g, be):
        mu = jnp.mean(v, -1, keepdims=True)
        var = jnp.mean((v - mu) ** 2, -1, keepdims=True)
        return (v - mu) * lax.rsqrt(var + LN_EPS) * g + be

    y1 = ln(o + x, g1[0], be1[0])
    f = jnp.maximum(y1 @ w1 + b1[0], 0.0) @ w2 + b2[0]
    return ln(f + y1, g2[0], be2[0])


if __name__ == "__main__":
    key = jax.random.PRNGKey(0)
    kx, kq, ko, k1, k2, kb1, kb2, kg1, kg2, kbe = jax.random.split(key, 10)

    x = jax.random.normal(kx, (B, S, D), dtype=jnp.float32)
    valid_lens = jnp.array([5, 8], dtype=jnp.int32)   # precondition: all >= 1

    # deterministic synthetic parameters (bias=False for attention projections)
    wq = 0.1 * jax.random.normal(kq, (D, D), dtype=jnp.float32)
    wo = 0.1 * jax.random.normal(ko, (D, D), dtype=jnp.float32)
    w1 = 0.1 * jax.random.normal(k1, (D, F), dtype=jnp.float32)
    b1 = 0.1 * jax.random.normal(kb1, (1, F), dtype=jnp.float32)
    w2 = 0.1 * jax.random.normal(k2, (F, D), dtype=jnp.float32)
    b2 = 0.1 * jax.random.normal(kb2, (1, D), dtype=jnp.float32)
    g1 = 1.0 + 0.1 * jax.random.normal(kg1, (1, D), dtype=jnp.float32)
    be1 = 0.1 * jax.random.normal(kbe, (1, D), dtype=jnp.float32)
    g2 = 1.0 + 0.1 * jax.random.normal(kg2, (1, D), dtype=jnp.float32)
    be2 = 0.05 * jnp.ones((1, D), dtype=jnp.float32)
    params = (wq, wo, w1, b1, w2, b2, g1, be1, g2, be2)

    out = encoder_block(x, valid_lens, params)
    out = jax.block_until_ready(out)

    ref = encoder_block_ref(x, valid_lens, params)
    assert out.shape == (B, S, D)
    # tolerance covers the approximate EUP reciprocal and the wrapper-side
    # algebraic weight folding (different rounding order than the reference)
    assert jnp.allclose(out, ref, atol=2e-3, rtol=2e-3), "mismatch vs reference"

    print("KERNEL_OK")
</pallas_src>

<mosaic_0001>
module attributes {stable_mosaic.version = 11 : i64} {
  func.func @encoder_block_kernel(%arg0: i32, %arg1: memref<2xi32, #tpu.memory_space<smem>>, %arg2: memref<16x32xf32, #tpu.memory_space<vmem>>, %arg3: memref<32x16xf32, #tpu.memory_space<vmem>>, %arg4: memref<4x32x32xf32, #tpu.memory_space<vmem>>, %arg5: memref<4x32x32xf32, #tpu.memory_space<vmem>>, %arg6: memref<32x64xf32, #tpu.memory_space<vmem>>, %arg7: memref<64x32xf32, #tpu.memory_space<vmem>>, %arg8: memref<8x64xf32, #tpu.memory_space<vmem>>, %arg9: memref<16x32xf32, #tpu.memory_space<vmem>>) attributes {dimension_semantics = [#tpu.dimension_semantics<arbitrary>], iteration_bounds = array<i64: 1>, scalar_prefetch = 1 : i64, scratch_operands = 0 : i64, tpu.core_type = #tpu.core_type<tc>, window_params = [{pipeline_mode = #tpu.pipeline_mode<synchronous>, transform_indices = @transform_0, window_bounds = array<i64: 16, 32>}, {pipeline_mode = #tpu.pipeline_mode<synchronous>, transform_indices = @transform_1, window_bounds = array<i64: 32, 16>}, {pipeline_mode = #tpu.pipeline_mode<synchronous>, transform_indices = @transform_2, window_bounds = array<i64: 4, 32, 32>}, {pipeline_mode = #tpu.pipeline_mode<synchronous>, transform_indices = @transform_3, window_bounds = array<i64: 4, 32, 32>}, {pipeline_mode = #tpu.pipeline_mode<synchronous>, transform_indices = @transform_4, window_bounds = array<i64: 32, 64>}, {pipeline_mode = #tpu.pipeline_mode<synchronous>, transform_indices = @transform_5, window_bounds = array<i64: 64, 32>}, {pipeline_mode = #tpu.pipeline_mode<synchronous>, transform_indices = @transform_6, window_bounds = array<i64: 8, 64>}, {pipeline_mode = #tpu.pipeline_mode<synchronous>, transform_indices = @transform_7, window_bounds = array<i64: 16, 32>}]} {
    %c0 = arith.constant 0 : index
    %c0_0 = arith.constant 0 : index
    %0 = vector.load %arg2[%c0, %c0_0] : memref<16x32xf32, #tpu.memory_space<vmem>>, vector<16x32xf32>
    %1 = vector.shape_cast %0 : vector<16x32xf32> to vector<1x16x32xf32>
    %2 = vector.broadcast %1 : vector<1x16x32xf32> to vector<4x16x32xf32>
    %c0_1 = arith.constant 0 : index
    %c0_2 = arith.constant 0 : index
    %3 = vector.load %arg3[%c0_1, %c0_2] : memref<32x16xf32, #tpu.memory_space<vmem>>, vector<32x16xf32>
    %4 = vector.shape_cast %3 : vector<32x16xf32> to vector<1x32x16xf32>
    %5 = vector.broadcast %4 : vector<1x32x16xf32> to vector<4x32x16xf32>
    %c0_3 = arith.constant 0 : index
    %c0_4 = arith.constant 0 : index
    %c0_5 = arith.constant 0 : index
    %6 = vector.load %arg4[%c0_3, %c0_4, %c0_5] : memref<4x32x32xf32, #tpu.memory_space<vmem>>, vector<4x32x32xf32>
    "tpu.trace_start"() <{level = 10 : i32, message = "hnk,hkl->hnl"}> : () -> ()
    %cst = arith.constant dense<0.000000e+00> : vector<4x16x32xf32>
    %7 = tpu.matmul %2, %6, %cst {dimension_numbers = #tpu.dot_dimension_numbers<[2], [1], [1], [2], [0, 0, 0, 1, 1, 2], [0], [0]>} : vector<4x16x32xf32>, vector<4x32x32xf32>, vector<4x16x32xf32> -> vector<4x16x32xf32>
    "tpu.trace_stop"() : () -> ()
    "tpu.trace_start"() <{level = 10 : i32, message = "hnl,hlm->hnm"}> : () -> ()
    %cst_6 = arith.constant dense<0.000000e+00> : vector<4x16x16xf32>
    %8 = tpu.matmul %7, %5, %cst_6 {dimension_numbers = #tpu.dot_dimension_numbers<[2], [1], [1], [2], [0, 0, 0, 1, 1, 2], [0], [0]>} : vector<4x16x32xf32>, vector<4x32x16xf32>, vector<4x16x16xf32> -> vector<4x16x16xf32>
    "tpu.trace_stop"() : () -> ()
    %9 = tpu.iota {dimensions = array<i32: 1>} : vector<1x16x16xi32>
    %10 = tpu.iota {dimensions = array<i32: 2>} : vector<1x16x16xi32>
    %c3_i32 = arith.constant 3 : i32
    %11 = vector.broadcast %c3_i32 : i32 to vector<1x16x16xi32>
    %12 = arith.shrsi %9, %11 : vector<1x16x16xi32>
    %c3_i32_7 = arith.constant 3 : i32
    %13 = vector.broadcast %c3_i32_7 : i32 to vector<1x16x16xi32>
    %14 = arith.shrsi %10, %13 : vector<1x16x16xi32>
    %c7_i32 = arith.constant 7 : i32
    %15 = vector.broadcast %c7_i32 : i32 to vector<1x16x16xi32>
    %16 = arith.andi %10, %15 : vector<1x16x16xi32>
    %c0_i32 = arith.constant 0 : i32
    %17 = vector.broadcast %c0_i32 : i32 to vector<1x16x16xi32>
    %c0_i32_8 = arith.constant 0 : i32
    %18 = vector.broadcast %c0_i32_8 : i32 to vector<1x16x16xi32>
    %19 = arith.cmpi eq, %14, %18 : vector<1x16x16xi32>
    %c0_9 = arith.constant 0 : index
    %20 = memref.load %arg1[%c0_9] : memref<2xi32, #tpu.memory_space<smem>>
    %21 = vector.broadcast %20 : i32 to vector<1x16x16xi32>
    %22 = arith.select %19, %21, %17 : vector<1x16x16xi1>, vector<1x16x16xi32>
    %c1_i32 = arith.constant 1 : i32
    %23 = vector.broadcast %c1_i32 : i32 to vector<1x16x16xi32>
    %24 = arith.cmpi eq, %14, %23 : vector<1x16x16xi32>
    %c1 = arith.constant 1 : index
    %25 = memref.load %arg1[%c1] : memref<2xi32, #tpu.memory_space<smem>>
    %26 = vector.broadcast %25 : i32 to vector<1x16x16xi32>
    %27 = arith.select %24, %26, %22 : vector<1x16x16xi1>, vector<1x16x16xi32>
    %28 = arith.cmpi eq, %12, %14 : vector<1x16x16xi32>
    %29 = arith.cmpi slt, %16, %27 : vector<1x16x16xi32>
    %30 = arith.andi %28, %29 : vector<1x16x16xi1>
    %cst_10 = arith.constant -1.000000e+06 : f32
    %31 = vector.shape_cast %30 : vector<1x16x16xi1> to vector<1x16x16xi1>
    %32 = vector.broadcast %31 : vector<1x16x16xi1> to vector<4x16x16xi1>
    %33 = vector.broadcast %cst_10 : f32 to vector<4x16x16xf32>
    %34 = arith.select %32, %8, %33 : vector<4x16x16xi1>, vector<4x16x16xf32>
    %cst_11 = arith.constant dense<0xFF800000> : vector<4x16xf32>
    %35 = vector.multi_reduction <maximumf>, %34, %cst_11 [2] : vector<4x16x16xf32> to vector<4x16xf32>
    %36 = vector.shape_cast %35 : vector<4x16xf32> to vector<4x16x1xf32>
    %37 = vector.broadcast %36 : vector<4x16x1xf32> to vector<4x16x16xf32>
    %38 = arith.subf %34, %37 : vector<4x16x16xf32>
    %39 = math.exp %38 : vector<4x16x16xf32>
    %cst_12 = arith.constant dense<0.000000e+00> : vector<4x16xf32>
    %40 = vector.multi_reduction <add>, %39, %cst_12 [2] : vector<4x16x16xf32> to vector<4x16xf32>
    %41 = vector.shape_cast %40 : vector<4x16xf32> to vector<4x16x1xf32>
    %42 = tpu.reciprocal %41 {approx = true} : vector<4x16x1xf32> -> vector<4x16x1xf32>
    %43 = vector.broadcast %42 : vector<4x16x1xf32> to vector<4x16x16xf32>
    %44 = arith.mulf %39, %43 : vector<4x16x16xf32>
    %c0_13 = arith.constant 0 : index
    %c0_14 = arith.constant 0 : index
    %c0_15 = arith.constant 0 : index
    %45 = vector.load %arg5[%c0_13, %c0_14, %c0_15] : memref<4x32x32xf32, #tpu.memory_space<vmem>>, vector<4x32x32xf32>
    "tpu.trace_start"() <{level = 10 : i32, message = "hnk,hkl->hnl"}> : () -> ()
    %cst_16 = arith.constant dense<0.000000e+00> : vector<4x16x32xf32>
    %46 = tpu.matmul %2, %45, %cst_16 {dimension_numbers = #tpu.dot_dimension_numbers<[2], [1], [1], [2], [0, 0, 0, 1, 1, 2], [0], [0]>} : vector<4x16x32xf32>, vector<4x32x32xf32>, vector<4x16x32xf32> -> vector<4x16x32xf32>
    "tpu.trace_stop"() : () -> ()
    "tpu.trace_start"() <{level = 10 : i32, message = "hnm,hml->hnl"}> : () -> ()
    %cst_17 = arith.constant dense<0.000000e+00> : vector<4x16x32xf32>
    %47 = tpu.matmul %44, %46, %cst_17 {dimension_numbers = #tpu.dot_dimension_numbers<[2], [1], [1], [2], [0, 0, 0, 1, 1, 2], [0], [0]>} : vector<4x16x16xf32>, vector<4x16x32xf32>, vector<4x16x32xf32> -> vector<4x16x32xf32>
    "tpu.trace_stop"() : () -> ()
    %cst_18 = arith.constant dense<0.000000e+00> : vector<16x32xf32>
    %48 = vector.multi_reduction <add>, %47, %cst_18 [0] : vector<4x16x32xf32> to vector<16x32xf32>
    %c0_19 = arith.constant 0 : index
    %c0_20 = arith.constant 0 : index
    %49 = vector.load %arg8[%c0_19, %c0_20] : memref<8x64xf32, #tpu.memory_space<vmem>>, vector<1x64xf32>
    %50 = vector.shape_cast %49 : vector<1x64xf32> to vector<64xf32>
    %c1_21 = arith.constant 1 : index
    %c0_22 = arith.constant 0 : index
    %51 = vector.load %arg8[%c1_21, %c0_22] : memref<8x64xf32, #tpu.memory_space<vmem>>, vector<1x32xf32>
    %52 = vector.shape_cast %51 : vector<1x32xf32> to vector<32xf32>
    %c2 = arith.constant 2 : index
    %c0_23 = arith.constant 0 : index
    %53 = vector.load %arg8[%c2, %c0_23] : memref<8x64xf32, #tpu.memory_space<vmem>>, vector<1x32xf32>
    %54 = vector.shape_cast %53 : vector<1x32xf32> to vector<32xf32>
    %c3 = arith.constant 3 : index
    %c0_24 = arith.constant 0 : index
    %55 = vector.load %arg8[%c3, %c0_24] : memref<8x64xf32, #tpu.memory_space<vmem>>, vector<1x32xf32>
    %56 = vector.shape_cast %55 : vector<1x32xf32> to vector<32xf32>
    %c4 = arith.constant 4 : index
    %c0_25 = arith.constant 0 : index
    %57 = vector.load %arg8[%c4, %c0_25] : memref<8x64xf32, #tpu.memory_space<vmem>>, vector<1x32xf32>
    %58 = vector.shape_cast %57 : vector<1x32xf32> to vector<32xf32>
    %c5 = arith.constant 5 : index
    %c0_26 = arith.constant 0 : index
    %59 = vector.load %arg8[%c5, %c0_26] : memref<8x64xf32, #tpu.memory_space<vmem>>, vector<1x32xf32>
    %60 = vector.shape_cast %59 : vector<1x32xf32> to vector<32xf32>
    %61 = arith.addf %48, %0 : vector<16x32xf32>
    %cst_27 = arith.constant dense<0.000000e+00> : vector<16xf32>
    %62 = vector.multi_reduction <add>, %61, %cst_27 [1] : vector<16x32xf32> to vector<16xf32>
    %63 = vector.shape_cast %62 : vector<16xf32> to vector<16x1xf32>
    %cst_28 = arith.constant 3.200000e+01 : f32
    %64 = vector.broadcast %cst_28 : f32 to vector<16x1xf32>
    %65 = arith.divf %63, %64 : vector<16x1xf32>
    %66 = vector.broadcast %65 : vector<16x1xf32> to vector<16x32xf32>
    %67 = arith.subf %61, %66 : vector<16x32xf32>
    %68 = arith.mulf %67, %67 : vector<16x32xf32>
    %cst_29 = arith.constant dense<0.000000e+00> : vector<16xf32>
    %69 = vector.multi_reduction <add>, %68, %cst_29 [1] : vector<16x32xf32> to vector<16xf32>
    %70 = vector.shape_cast %69 : vector<16xf32> to vector<16x1xf32>
    %cst_30 = arith.constant 3.200000e+01 : f32
    %71 = vector.broadcast %cst_30 : f32 to vector<16x1xf32>
    %72 = arith.divf %70, %71 : vector<16x1xf32>
    %73 = vector.broadcast %65 : vector<16x1xf32> to vector<16x32xf32>
    %74 = arith.subf %61, %73 : vector<16x32xf32>
    %cst_31 = arith.constant 9.99999974E-6 : f32
    %75 = vector.broadcast %cst_31 : f32 to vector<16x1xf32>
    %76 = arith.addf %72, %75 : vector<16x1xf32>
    %77 = math.rsqrt %76 : vector<16x1xf32>
    %78 = vector.broadcast %77 : vector<16x1xf32> to vector<16x32xf32>
    %79 = arith.mulf %74, %78 : vector<16x32xf32>
    %80 = vector.shape_cast %54 : vector<32xf32> to vector<1x32xf32>
    %81 = vector.broadcast %80 : vector<1x32xf32> to vector<16x32xf32>
    %82 = arith.mulf %79, %81 : vector<16x32xf32>
    %83 = vector.shape_cast %56 : vector<32xf32> to vector<1x32xf32>
    %84 = vector.broadcast %83 : vector<1x32xf32> to vector<16x32xf32>
    %85 = arith.addf %82, %84 : vector<16x32xf32>
    %c0_32 = arith.constant 0 : index
    %c0_33 = arith.constant 0 : index
    %86 = vector.load %arg6[%c0_32, %c0_33] : memref<32x64xf32, #tpu.memory_space<vmem>>, vector<32x64xf32>
    %cst_34 = arith.constant dense<0.000000e+00> : vector<16x64xf32>
    %87 = tpu.matmul %85, %86, %cst_34 {dimension_numbers = #tpu.dot_dimension_numbers<[1], [0], [0], [1], [0, 0, 1, 1], [], []>} : vector<16x32xf32>, vector<32x64xf32>, vector<16x64xf32> -> vector<16x64xf32>
    %88 = vector.shape_cast %50 : vector<64xf32> to vector<1x64xf32>
    %89 = vector.broadcast %88 : vector<1x64xf32> to vector<16x64xf32>
    %90 = arith.addf %87, %89 : vector<16x64xf32>
    %cst_35 = arith.constant 0.000000e+00 : f32
    %91 = vector.broadcast %cst_35 : f32 to vector<16x64xf32>
    %92 = arith.maximumf %90, %91 : vector<16x64xf32>
    %c0_36 = arith.constant 0 : index
    %c0_37 = arith.constant 0 : index
    %93 = vector.load %arg7[%c0_36, %c0_37] : memref<64x32xf32, #tpu.memory_space<vmem>>, vector<64x32xf32>
    %cst_38 = arith.constant dense<0.000000e+00> : vector<16x32xf32>
    %94 = tpu.matmul %92, %93, %cst_38 {dimension_numbers = #tpu.dot_dimension_numbers<[1], [0], [0], [1], [0, 0, 1, 1], [], []>} : vector<16x64xf32>, vector<64x32xf32>, vector<16x32xf32> -> vector<16x32xf32>
    %95 = vector.shape_cast %52 : vector<32xf32> to vector<1x32xf32>
    %96 = vector.broadcast %95 : vector<1x32xf32> to vector<16x32xf32>
    %97 = arith.addf %94, %96 : vector<16x32xf32>
    %98 = arith.addf %97, %85 : vector<16x32xf32>
    %cst_39 = arith.constant dense<0.000000e+00> : vector<16xf32>
    %99 = vector.multi_reduction <add>, %98, %cst_39 [1] : vector<16x32xf32> to vector<16xf32>
    %100 = vector.shape_cast %99 : vector<16xf32> to vector<16x1xf32>
    %cst_40 = arith.constant 3.200000e+01 : f32
    %101 = vector.broadcast %cst_40 : f32 to vector<16x1xf32>
    %102 = arith.divf %100, %101 : vector<16x1xf32>
    %103 = vector.broadcast %102 : vector<16x1xf32> to vector<16x32xf32>
    %104 = arith.subf %98, %103 : vector<16x32xf32>
    %105 = arith.mulf %104, %104 : vector<16x32xf32>
    %cst_41 = arith.constant dense<0.000000e+00> : vector<16xf32>
    %106 = vector.multi_reduction <add>, %105, %cst_41 [1] : vector<16x32xf32> to vector<16xf32>
    %107 = vector.shape_cast %106 : vector<16xf32> to vector<16x1xf32>
    %cst_42 = arith.constant 3.200000e+01 : f32
    %108 = vector.broadcast %cst_42 : f32 to vector<16x1xf32>
    %109 = arith.divf %107, %108 : vector<16x1xf32>
    %110 = vector.broadcast %102 : vector<16x1xf32> to vector<16x32xf32>
    %111 = arith.subf %98, %110 : vector<16x32xf32>
    %cst_43 = arith.constant 9.99999974E-6 : f32
    %112 = vector.broadcast %cst_43 : f32 to vector<16x1xf32>
    %113 = arith.addf %109, %112 : vector<16x1xf32>
    %114 = math.rsqrt %113 : vector<16x1xf32>
    %115 = vector.broadcast %114 : vector<16x1xf32> to vector<16x32xf32>
    %116 = arith.mulf %111, %115 : vector<16x32xf32>
    %117 = vector.shape_cast %58 : vector<32xf32> to vector<1x32xf32>
    %118 = vector.broadcast %117 : vector<1x32xf32> to vector<16x32xf32>
    %119 = arith.mulf %116, %118 : vector<16x32xf32>
    %120 = vector.shape_cast %60 : vector<32xf32> to vector<1x32xf32>
    %121 = vector.broadcast %120 : vector<1x32xf32> to vector<16x32xf32>
    %122 = arith.addf %119, %121 : vector<16x32xf32>
    %c0_44 = arith.constant 0 : index
    %c0_45 = arith.constant 0 : index
    %123 = vector.load %arg9[%c0_44, %c0_45] : memref<16x32xf32, #tpu.memory_space<vmem>>, vector<16x32xf32>
    tpu.vector_store %arg9[%c0_44, %c0_45], %122 {strides = array<i32>} : memref<16x32xf32, #tpu.memory_space<vmem>>, vector<16x32xf32>,
    return
  }
  func.func @transform_0(%arg0: i32, %arg1: memref<2xi32, #tpu.memory_space<smem>>) -> (i32, i32) {
    %c0_i32 = arith.constant 0 : i32
    %c0_i32_0 = arith.constant 0 : i32
    %c0_i32_1 = arith.constant 0 : i32
    return %c0_i32, %c0_i32_0 : i32, i32
  }
  func.func @transform_1(%arg0: i32, %arg1: memref<2xi32, #tpu.memory_space<smem>>) -> (i32, i32) {
    %c0_i32 = arith.constant 0 : i32
    %c0_i32_0 = arith.constant 0 : i32
    %c0_i32_1 = arith.constant 0 : i32
    return %c0_i32, %c0_i32_0 : i32, i32
  }
  func.func @transform_2(%arg0: i32, %arg1: memref<2xi32, #tpu.memory_space<smem>>) -> (i32, i32, i32) {
    %c0_i32 = arith.constant 0 : i32
    %c0_i32_0 = arith.constant 0 : i32
    %c0_i32_1 = arith.constant 0 : i32
    %c0_i32_2 = arith.constant 0 : i32
    return %c0_i32, %c0_i32_0, %c0_i32_1 : i32, i32, i32
  }
  func.func @transform_3(%arg0: i32, %arg1: memref<2xi32, #tpu.memory_space<smem>>) -> (i32, i32, i32) {
    %c0_i32 = arith.constant 0 : i32
    %c0_i32_0 = arith.constant 0 : i32
    %c0_i32_1 = arith.constant 0 : i32
    %c0_i32_2 = arith.constant 0 : i32
    return %c0_i32, %c0_i32_0, %c0_i32_1 : i32, i32, i32
  }
  func.func @transform_4(%arg0: i32, %arg1: memref<2xi32, #tpu.memory_space<smem>>) -> (i32, i32) {
    %c0_i32 = arith.constant 0 : i32
    %c0_i32_0 = arith.constant 0 : i32
    %c0_i32_1 = arith.constant 0 : i32
    return %c0_i32, %c0_i32_0 : i32, i32
  }
  func.func @transform_5(%arg0: i32, %arg1: memref<2xi32, #tpu.memory_space<smem>>) -> (i32, i32) {
    %c0_i32 = arith.constant 0 : i32
    %c0_i32_0 = arith.constant 0 : i32
    %c0_i32_1 = arith.constant 0 : i32
    return %c0_i32, %c0_i32_0 : i32, i32
  }
  func.func @transform_6(%arg0: i32, %arg1: memref<2xi32, #tpu.memory_space<smem>>) -> (i32, i32) {
    %c0_i32 = arith.constant 0 : i32
    %c0_i32_0 = arith.constant 0 : i32
    %c0_i32_1 = arith.constant 0 : i32
    return %c0_i32, %c0_i32_0 : i32, i32
  }
  func.func @transform_7(%arg0: i32, %arg1: memref<2xi32, #tpu.memory_space<smem>>) -> (i32, i32) {
    %c0_i32 = arith.constant 0 : i32
    %c0_i32_0 = arith.constant 0 : i32
    %c0_i32_1 = arith.constant 0 : i32
    return %c0_i32, %c0_i32_0 : i32, i32
  }
}

</mosaic_0001>

<bundles_post_ra>
// kernel: tpu_custom_call.1
= control target key start
LH: loop header
LB: loop body
LE: loop exit
PB: predicated region body
PF: predicated region fallthrough
CT: control target
= control target key end

     0   :  { %s2553_s0 = inlined_call_operand.vmem [shape: s32[2], index: 0, kind: input, shape index: {}]   ;;  %s2554_s1 = inlined_call_operand.vmem [shape: f32[16,32], index: 1, kind: input, shape index: {}]   ;;  %s2555_s2 = inlined_call_operand.vmem [shape: f32[32,16], index: 2, kind: input, shape index: {}]   ;;  %s2556_s3 = inlined_call_operand.vmem [shape: f32[4,32,32], index: 3, kind: input, shape index: {}]   ;;  %s2557_s4 = inlined_call_operand.hbm [shape: f32[4,32,32], index: 4, kind: input, shape index: {}]   ;;  %s2558_s5 = inlined_call_operand.hbm [shape: f32[32,64], index: 5, kind: input, shape index: {}]   ;;  %s2559_s6 = inlined_call_operand.vmem [shape: f32[64,32], index: 6, kind: input, shape index: {}]   ;;  %s2560_s7 = inlined_call_operand.vmem [shape: f32[8,64], index: 7, kind: input, shape index: {}]   ;;  %s2561_s8 = inlined_call_operand.hbm [shape: f32[16,32], index: 8, kind: output, shape index: {}]  }
   0x1   :  { %s13_s29 = sshll.u32 %s2553_s0, 4  ;;  %s14_s29 = int_to_ptr.vmem [resolvable:$true] %s13_s29 }
   0x2   :  { %s2167_s30 = scalar_lea.vmem %s14_s29, 16  ;;  %p2172_p1 = scmp.lt.s32.totalorder %s14_s29, %s14_s29 }
   0x3   :  { %p2168_p0 = scmp.ne.s32.totalorder %s14_s29, %s2167_s30  ;;  %p2173_p2 = scmp.lt.s32.totalorder %s2167_s30, %s2167_s30 }
   0x5   :  { %p2174_p3 = por %p2173_p2, %p2172_p1 }
   0x7   :  { %p2175_p4 = pnand %p2174_p3, %p2168_p0 }
   0x9   :  { %2178 = shalt.err (!%p2175_p4)  }
   0xa   :  { %s2247_s9 = smov [#allocation3]  }
   0xb   :  { %16 = dma.vmem_to_smem %s14_s29, 16, %s2247_s9, [#allocation2] }
   0xc   :  { %2239 = dma.done.wait [#allocation2], 16 }
   0xd   :  { %2240 = vsyncadd [#allocation2], 4294967280 }
   0xe   :  { %18 = sfence }
   0xf   :  { %19 = vsyncpa [#allocation5], 0 }
  0x10   :  { %20 = vsyncpa [#allocation8], 0 }
  0x11   :  { %21 = vsyncpa [#allocation6], 0  ;;  %s2248_s10 = smov [#allocation4]  }
  0x12   :  { %s33_s11 = sshll.u32 %s2248_s10, 4  ;;  %s34_s11 = int_to_ptr.vmem [resolvable:$true] %s33_s11 }
  0x13   :  { %s2187_s0 = scalar_lea.vmem %s34_s11, 2048  ;;  %p2192_p6 = scmp.lt.s32.totalorder %s34_s11, %s34_s11 }
  0x14   :  { %p2188_p5 = scmp.ne.s32.totalorder %s34_s11, %s2187_s0  ;;  %p2193_p7 = scmp.lt.s32.totalorder %s2187_s0, %s2187_s0 }
  0x16   :  { %p2194_p8 = por %p2193_p7, %p2192_p6 }
  0x18   :  { %p2195_p9 = pnand %p2194_p8, %p2188_p5 }
  0x1a   :  { %2198 = shalt.err (!%p2195_p9)
}
  0x1b   :  { %s2249_s12 = smov 128   ;;  %s2250_s13 = smov 8  }
  0x1c   :  { %39 = dma.hbm_to_vmem [thread:$0]  %s2557_s4, 2048, %s34_s11, [#allocation5], %s2249_s12, %s2249_s12, %s2250_s13  }
  0x1d   :  { %s2251_s16 = smov [#allocation7]  }
  0x1e   :  { %s45_s17 = sshll.u32 %s2251_s16, 4  ;;  %s46_s17 = int_to_ptr.vmem [resolvable:$true] %s45_s17 }
  0x1f   :  { %s2207_s18 = scalar_lea.vmem %s46_s17, 512  ;;  %p2212_p11 = scmp.lt.s32.totalorder %s46_s17, %s46_s17 }
  0x20   :  { %p2208_p10 = scmp.ne.s32.totalorder %s46_s17, %s2207_s18  ;;  %p2213_p12 = scmp.lt.s32.totalorder %s2207_s18, %s2207_s18 }
  0x22   :  { %p2214_p13 = por %p2213_p12, %p2212_p11 }
  0x24   :  { %p2215_p0 = pnand %p2214_p13, %p2208_p10 }
  0x26   :  { %2218 = shalt.err (!%p2215_p0)
}
  0x27   :  { %51 = dma.hbm_to_vmem [thread:$0]  %s2558_s5, 512, %s46_s17, [#allocation8], %s2249_s12, %s2249_s12, %s2250_s13  }
  0x28   :  { %2241 = dma.done.wait [#allocation5], 2048  }
  0x29   :  { %2242 = vsyncadd [#allocation5], 4294965248 }
  0x2a   :  { %2243 = dma.done.wait [#allocation8], 512  }
  0x2b   :  { %2244 = vsyncadd [#allocation8], 4294966784  ;;  %v71_v0 = vld [vmem:[%s2556_s3 + $0x18] sm:$0xff]  ;;  %v70_v2 = vld [vmem:[%s2556_s3 + $0x10] sm:$0xff]  ;;  %vm84_vm0 = vcmask 261120   ;;  %v715_v46 = vlaneseq  ;;  %s1800_s17 = sld [smem:[#allocation3 + $0x1]] }
  0x2c   :  { %v75_v1 = vld [vmem:[%s2556_s3 + $0x38] sm:$0xff]  ;;  %1931 = vmatprep.subr.mxu0 %v71_v0  ;;  %v74_v3 = vld [vmem:[%s2556_s3 + $0x30] sm:$0xff]  ;;  %v69_v4 = vld [vmem:[%s2556_s3 + $0x8] sm:$0xff]  ;;  %vm749_vm7 = vcmask 130048   ;;  %vm1642_vm9 = vcmask 523264   ;;  %s2252_s19 = smov [#allocation9]  }
  0x2d   :  { %1942 = vmatprep.subr.mxu1 %v75_v1  ;;  %1932 = vmatpush3.msra.mxu0 %v71_v0  ;;  %v73_v5 = vld [vmem:[%s2556_s3 + $0x28] sm:$0xff]  ;;  %v68_v6 = vld [vmem:[%s2556_s3] sm:$0xff]  ;;  %v79_v10 = vld [vmem:[%s2556_s3 + $0x58] sm:$0xff]  ;;  %v719_v47 = vand.u32 127, %v715_v46  ;;  %v716_v49 = vshrl.u32 %v715_v46, 7  ;;  %s1771_s20 = sshll.u32 %s2252_s19, 4  ;;  %s1772_s20 = int_to_ptr.vmem [resolvable:$true] %s1771_s20 }
  0x2e   :  { %1943 = vmatpush3.msra.mxu1 %v75_v1  ;;  %1933 = vmatprep.subr.mxu0 %v70_v2  ;;  %v72_v7 = vld [vmem:[%s2556_s3 + $0x20] sm:$0xff]  ;;  %v2345_v9 = vld [vmem:[%s2554_s1 + $0x8] sm:$0xff]  ;;  %v83_v11 = vld [vmem:[%s2556_s3 + $0x78] sm:$0xff]  ;;  %s2219_s4 = scalar_lea.vmem %s1772_s20, 256  ;;  %p2224_p2 = scmp.lt.s32.totalorder %s1772_s20, %s1772_s20 }
  0x2f   :  { %1944 = vmatprep.subr.mxu1 %v74_v3  ;;  %1934 = vmatpush3.msra.mxu0 %v70_v2  ;;  %v2340_v8 = vld [vmem:[%s2554_s1] sm:$0xff]  ;;  %v78_v12 = vld [vmem:[%s2556_s3 + $0x50] sm:$0xff]  ;;  %v77_v14 = vld [vmem:[%s2556_s3 + $0x48] sm:$0xff]  ;;  %v722_v48 = vshra.s32 %v719_v47, 3  ;;  %v717_v51 = vadd.s32 8, %v716_v49  ;;  %v723_v55 = vand.u32 7, %v719_v47  ;;  %p2220_p1 = scmp.ne.s32.totalorder %s1772_s20, %s2219_s4  ;;  %p2225_p3 = scmp.lt.s32.totalorder %s2219_s4, %s2219_s4 }
  0x30   :  { %1945 = vmatpush3.msra.mxu1 %v74_v3  ;;  %1935 = vmatprep.subr.mxu0 %v69_v4  ;;  %v82_v13 = vld [vmem:[%s2556_s3 + $0x70] sm:$0xff]  ;;  %v81_v15 = vld [vmem:[%s2556_s3 + $0x68] sm:$0xff]  ;;  %v76_v16 = vld [vmem:[%s2556_s3 + $0x40] sm:$0xff]  ;;  %v720_v57 = vshra.s32 %v716_v49, 3 }
  0x31   :  { %1946 = vmatprep.subr.mxu1 %v73_v5  ;;  %1936 = vmatpush3.msra.mxu0 %v69_v4  ;;  %v80_v17 = vld [vmem:[%s2556_s3 + $0x60] sm:$0xff]  ;;  %v67_v18 = vld [vmem:[%s2555_s2 + $0x18] sm:$0xff]  ;;  %v66_v19 = vld [vmem:[%s2555_s2 + $0x10] sm:$0xff]  ;;  %vm724_vm1 = vcmp.eq.s32.totalorder %v722_v48, 0  ;;  %vm728_vm2 = vcmp.eq.s32.totalorder %v722_v48, 1  ;;  %v730_v53 = vstv %s1800_s17  ;;  %v721_v54 = vshra.s32 %v717_v51, 3  ;;  %p2226_p4 = por %p2225_p3, %p2224_p2 }
  0x32   :  { %1947 = vmatpush3.msra.mxu1 %v73_v5  ;;  %1937 = vmatprep.subr.mxu0 %v68_v6  ;;  %v65_v20 = vld [vmem:[%s2555_s2 + $0x8] sm:$0xff]  ;;  %v64_v21 = vld [vmem:[%s2555_s2] sm:$0xff]  ;;  %v841_v30 = vld [vmem:[#allocation4 + $0x18] sm:$0xff]  ;;  %s725_s2 = sld [smem:[#allocation3]]  ;;  %vm732_vm5 = vcmp.eq.s32.totalorder %v720_v57, %v722_v48 }
  0x33   :  { %1948 = vmatprep.subr.mxu1 %v72_v7  ;;  %1938 = vmatpush3.msra.mxu0 %v68_v6  ;;  %v840_v31 = vld [vmem:[#allocation4 + $0x10] sm:$0xff]  ;;  %v845_v32 = vld [vmem:[#allocation4 + $0x38] sm:$0xff]  ;;  %v839_v34 = vld [vmem:[#allocation4 + $0x8] sm:$0xff]  ;;  %vm733_vm3 = vcmp.eq.s32.totalorder %v721_v54, %v722_v48  ;;  %p2227_p5 = pnand %p2226_p4, %p2220_p1 }
  0x34   :  { %1939 = vmatprep.mubr.msk.f32.mxu0 %vm84_vm0, %v2340_v8  ;;  %1949 = vmatpush3.msra.mxu1 %v72_v7  ;;  %v844_v33 = vld [vmem:[#allocation4 + $0x30] sm:$0xff]  ;;  %v843_v35 = vld [vmem:[#allocation4 + $0x28] sm:$0xff]  ;;  %v838_v36 = vld [vmem:[#allocation4] sm:$0xff] }
  0x35   :  { %1950 = vmatprep.mubr.msk.f32.mxu1 %vm84_vm0, %v2340_v8  ;;  %1940 = vmatmul.mubr.msk.f32.vlgmr.msra.gmra.mxu0 %vm84_vm0, %v2345_v9  ;;  %v842_v37 = vld [vmem:[#allocation4 + $0x20] sm:$0xff]  ;;  %v849_v38 = vld [vmem:[#allocation4 + $0x58] sm:$0xff]  ;;  %v848_v40 = vld [vmem:[#allocation4 + $0x50] sm:$0xff] }
  0x36   :  { %1951 = vmatmul.mubr.msk.f32.vlgmr.msra.gmra.mxu1 %vm84_vm0, %v2345_v9  ;;  %1953 = vmatprep.subr.mxu0 %v79_v10  ;;  %v853_v39 = vld [vmem:[#allocation4 + $0x78] sm:$0xff]  ;;  %v852_v41 = vld [vmem:[#allocation4 + $0x70] sm:$0xff]  ;;  %v847_v42 = vld [vmem:[#allocation4 + $0x48] sm:$0xff] }
  0x37   :  { %1964 = vmatprep.subr.mxu1 %v83_v11  ;;  %1954 = vmatpush3.msra.mxu0 %v79_v10  ;;  %v851_v43 = vld [vmem:[#allocation4 + $0x68] sm:$0xff]  ;;  %v846_v44 = vld [vmem:[#allocation4 + $0x40] sm:$0xff] }
  0x38   :  { %1965 = vmatpush3.msra.mxu1 %v83_v11  ;;  %1955 = vmatprep.subr.mxu0 %v78_v12  ;;  %v850_v45 = vld [vmem:[#allocation4 + $0x60] sm:$0xff]  ;;  %v726_v50 = vstv %s725_s2 }
  0x39   :  { %1966 = vmatprep.subr.mxu1 %v82_v13  ;;  %1956 = vmatpush3.msra.mxu0 %v78_v12  ;;  %v727_v52 = vsel %vm724_vm1, %v726_v50, 0 }
  0x3a   :  { %1967 = vmatpush3.msra.mxu1 %v82_v13  ;;  %1957 = vmatprep.subr.mxu0 %v77_v14  ;;  %v731_v56 = vsel %vm728_vm2, %v730_v53, %v727_v52 }
  0x3b   :  { %1968 = vmatprep.subr.mxu1 %v81_v15  ;;  %1958 = vmatpush3.msra.mxu0 %v77_v14  ;;  %vm734_vm4 = vcmp.lt.s32.totalorder %v723_v55, %v731_v56 }
  0x3c   :  { %1961 = vmatprep.mubr.msk.f32.mxu0 %vm84_vm0, %v2340_v8  ;;  %1959 = vmatprep.subr.mxu0 %v76_v16  ;;  %vm2423_vm6 = vmand %vm733_vm3, %vm734_vm4 }
  0x3d   :  { %1969 = vmatpush3.msra.mxu1 %v81_v15  ;;  %1960 = vmatpush3.msra.mxu0 %v76_v16  ;;  %vm2427_vm8 = vmand %vm732_vm5, %vm734_vm4 }
  0x3e   :  { %1970 = vmatprep.subr.mxu1 %v80_v17  ;;  %1962 = vmatmul.mubr.msk.f32.vlgmr.msra.gmra.mxu0 %vm84_vm0, %v2345_v9 }
  0x3f   :  { %1971 = vmatpush3.msra.mxu1 %v80_v17  ;;  %1972 = vmatprep.mubr.msk.f32.mxu1 %vm84_vm0, %v2340_v8 }
  0x40   :  { %1975 = vmatprep.subr.mxu0 %v67_v18  ;;  %1973 = vmatmul.mubr.msk.f32.vlgmr.msra.gmra.mxu1 %vm84_vm0, %v2345_v9 }
  0x41   :  { %1986 = vmatprep.subr.mxu1 %v67_v18  ;;  %1976 = vmatpush3.msra.mxu0 %v67_v18 }
  0x42   :  { %1987 = vmatpush3.msra.mxu1 %v67_v18  ;;  %1977 = vmatprep.subr.mxu0 %v66_v19 }
  0x43   :  { %1988 = vmatprep.subr.mxu1 %v66_v19  ;;  %1978 = vmatpush3.msra.mxu0 %v66_v19 }
  0x44   :  { %1989 = vmatpush3.msra.mxu1 %v66_v19  ;;  %1979 = vmatprep.subr.mxu0 %v65_v20 }
  0x45   :  { %1990 = vmatprep.subr.mxu1 %v65_v20  ;;  %1980 = vmatpush3.msra.mxu0 %v65_v20 }
  0x46   :  { %1991 = vmatpush3.msra.mxu1 %v65_v20  ;;  %1981 = vmatprep.subr.mxu0 %v64_v21 }
  0x47   :  { %1992 = vmatprep.subr.mxu1 %v64_v21  ;;  %1982 = vmatpush3.msra.mxu0 %v64_v21 }
  0x48   :  { %1993 = vmatpush3.msra.mxu1 %v64_v21  ;;  %1997 = vmatprep.subr.mxu0 %v67_v18 }
  0x49   :  { %2008 = vmatprep.subr.mxu1 %v67_v18 }
  0xf5   :  { %v1941_v22 = vpop.f32.mrf.mxu0 }
  0xf6   :  { %v1952_v23 = vpop.f32.mrf.mxu1 }
  0xf7   :  { %v157_v24 = vpop.f32.mrf.mxu0 }
  0xf8   :  { %v232_v25 = vpop.f32.mrf.mxu1  ;;  %1983 = vmatprep.mubr.msk.f32.mxu0 %vm84_vm0, %v157_v24 }
  0xf9   :  { %1994 = vmatprep.mubr.msk.f32.mxu1 %vm84_vm0, %v232_v25  ;;  %1984 = vmatmul.mubr.msk.f32.vlgmr.msra.gmra.mxu0 %vm84_vm0, %v1941_v22 }
  0xfa   :  { %1995 = vmatmul.mubr.msk.f32.vlgmr.msra.gmra.mxu1 %vm84_vm0, %v1952_v23  ;;  %1998 = vmatpush3.msra.mxu0 %v67_v18 }
  0xfb   :  { %2009 = vmatpush3.msra.mxu1 %v67_v18  ;;  %1999 = vmatprep.subr.mxu0 %v66_v19 }
  0xfc   :  { %2010 = vmatprep.subr.mxu1 %v66_v19  ;;  %2000 = vmatpush3.msra.mxu0 %v66_v19 }
  0xfd   :  { %2011 = vmatpush3.msra.mxu1 %v66_v19  ;;  %2001 = vmatprep.subr.mxu0 %v65_v20 }
  0xfe   :  { %2012 = vmatprep.subr.mxu1 %v65_v20  ;;  %v1963_v26 = vpop.f32.mrf.mxu0  ;;  %2002 = vmatpush3.msra.mxu0 %v65_v20 }
  0xff   :  { %2013 = vmatpush3.msra.mxu1 %v65_v20  ;;  %2003 = vmatprep.subr.mxu0 %v64_v21 }
 0x100   :  { %2014 = vmatprep.subr.mxu1 %v64_v21  ;;  %v307_v27 = vpop.f32.mrf.mxu0  ;;  %v1974_v28 = vpop.f32.mrf.mxu1  ;;  %2004 = vmatpush3.msra.mxu0 %v64_v21 }
 0x101   :  { %2015 = vmatpush3.msra.mxu1 %v64_v21  ;;  %2005 = vmatprep.mubr.msk.f32.mxu0 %vm84_vm0, %v307_v27 }
 0x102   :  { %v382_v29 = vpop.f32.mrf.mxu1  ;;  %2006 = vmatmul.mubr.msk.f32.vlgmr.msra.gmra.mxu0 %vm84_vm0, %v1963_v26  ;;  %2019 = vmatprep.subr.mxu0 %v841_v30 }
 0x103   :  { %2016 = vmatprep.mubr.msk.f32.mxu1 %vm84_vm0, %v382_v29  ;;  %2027 = vmatprep.mubr.msk.f32.mxu0 %vm84_vm0, %v2340_v8 }
 0x104   :  { %2017 = vmatmul.mubr.msk.f32.vlgmr.msra.gmra.mxu1 %vm84_vm0, %v1974_v28  ;;  %2030 = vmatprep.subr.mxu1 %v845_v32 }
 0x105   :  { %2038 = vmatprep.mubr.msk.f32.mxu1 %vm84_vm0, %v2340_v8  ;;  %2020 = vmatpush3.msra.mxu0 %v841_v30 }
 0x106   :  { %2031 = vmatpush3.msra.mxu1 %v845_v32  ;;  %2021 = vmatprep.subr.mxu0 %v840_v31 }
 0x107   :  { %2032 = vmatprep.subr.mxu1 %v844_v33  ;;  %2022 = vmatpush3.msra.mxu0 %v840_v31 }
 0x108   :  { %2033 = vmatpush3.msra.mxu1 %v844_v33  ;;  %2023 = vmatprep.subr.mxu0 %v839_v34 }
 0x109   :  { %2034 = vmatprep.subr.mxu1 %v843_v35  ;;  %2024 = vmatpush3.msra.mxu0 %v839_v34 }
 0x10a   :  { %2035 = vmatpush3.msra.mxu1 %v843_v35  ;;  %2025 = vmatprep.subr.mxu0 %v838_v36 }
 0x10b   :  { %2036 = vmatprep.subr.mxu1 %v842_v37  ;;  %2026 = vmatpush3.msra.mxu0 %v838_v36 }
 0x10c   :  { %2037 = vmatpush3.msra.mxu1 %v842_v37  ;;  %2028 = vmatmul.mubr.msk.f32.vlgmr.msra.gmra.mxu0 %vm84_vm0, %v2345_v9 }
 0x10d   :  { %2041 = vmatprep.subr.mxu0 %v849_v38  ;;  %2052 = vmatprep.subr.mxu1 %v853_v39 }
 0x10e   :  { %2042 = vmatpush3.msra.mxu0 %v849_v38  ;;  %2039 = vmatmul.mubr.msk.f32.vlgmr.msra.gmra.mxu1 %vm84_vm0, %v2345_v9 }
 0x10f   :  { %2043 = vmatprep.subr.mxu0 %v848_v40  ;;  %2053 = vmatpush3.msra.mxu1 %v853_v39 }
 0x110   :  { %2044 = vmatpush3.msra.mxu0 %v848_v40  ;;  %2054 = vmatprep.subr.mxu1 %v852_v41 }
 0x111   :  { %2045 = vmatprep.subr.mxu0 %v847_v42  ;;  %2055 = vmatpush3.msra.mxu1 %v852_v41 }
 0x112   :  { %2046 = vmatpush3.msra.mxu0 %v847_v42  ;;  %2056 = vmatprep.subr.mxu1 %v851_v43 }
 0x113   :  { %2047 = vmatprep.subr.mxu0 %v846_v44  ;;  %2057 = vmatpush3.msra.mxu1 %v851_v43 }
 0x114   :  { %2048 = vmatpush3.msra.mxu0 %v846_v44  ;;  %2049 = vmatprep.mubr.msk.f32.mxu0 %vm84_vm0, %v2340_v8 }
 0x115   :  { %2058 = vmatprep.subr.mxu1 %v850_v45  ;;  %2050 = vmatmul.mubr.msk.f32.vlgmr.msra.gmra.mxu0 %vm84_vm0, %v2345_v9 }
 0x116   :  { %2059 = vmatpush3.msra.mxu1 %v850_v45  ;;  %2060 = vmatprep.mubr.msk.f32.mxu1 %vm84_vm0, %v2340_v8 }
 0x117   :  { %2061 = vmatmul.mubr.msk.f32.vlgmr.msra.gmra.mxu1 %vm84_vm0, %v2345_v9 }
 0x1b9   :  { %v1985_v59 = vpop.f32.mrf.mxu0 }
 0x1ba   :  { %v1996_v60 = vpop.f32.mrf.mxu1  ;;  %v742_v5 = vsel %vm2423_vm6, %v1985_v59, -1000000.0 }
 0x1bb   :  { %v744_v62 = vsel %vm2423_vm6, %v1996_v60, -1000000.0  ;;  %v463_v63 = vpop.f32.mrf.mxu0  ;;  %v753_v7 = vsel %vm749_vm7, %v742_v5, -inf }
 0x1bc   :  { %v544_v0 = vpop.f32.mrf.mxu1  ;;  %v759_v1 = vsel %vm749_vm7, %v744_v62, -inf  ;;  %v741_v2 = vsel %vm2427_vm8, %v463_v63, -1000000.0 }
 0x1bd   :  { %v743_v3 = vsel %vm2427_vm8, %v544_v0, -1000000.0  ;;  %760 = vmax.xlane.f32.xlu1 %v759_v1  ;;  %v750_v4 = vsel %vm749_vm7, %v741_v2, -inf }
 0x1be   :  { %751 = vmax.xlane.f32.xlu0 %v750_v4  ;;  %v756_v6 = vsel %vm749_vm7, %v743_v3, -inf }
 0x1c1   :  { %757 = vmax.xlane.f32.xlu1 %v756_v6 }
 0x1c2   :  { %v2007_v10 = vpop.f32.mrf.mxu0  ;;  %754 = vmax.xlane.f32.xlu0 %v753_v7 }
 0x1c3   :  { %v746_v11 = vsel %vm2423_vm6, %v2007_v10, -1000000.0 }
 0x1c4   :  { %v625_v12 = vpop.f32.mrf.mxu0  ;;  %v2018_v13 = vpop.f32.mrf.mxu1  ;;  %v765_v14 = vsel %vm749_vm7, %v746_v11, -inf }
 0x1c5   :  { %v745_v15 = vsel %vm2427_vm8, %v625_v12, -1000000.0  ;;  %v748_v16 = vsel %vm2423_vm6, %v2018_v13, -1000000.0  ;;  %766 = vmax.xlane.f32.xlu1 %v765_v14 }
 0x1c6   :  { %v706_v17 = vpop.f32.mrf.mxu1  ;;  %v762_v18 = vsel %vm749_vm7, %v745_v15, -inf  ;;  %v771_v19 = vsel %vm749_vm7, %v748_v16, -inf }
 0x1c7   :  { %v747_v20 = vsel %vm2427_vm8, %v706_v17, -1000000.0  ;;  %763 = vmax.xlane.f32.xlu0 %v762_v18 }
 0x1c8   :  { %v768_v21 = vsel %vm749_vm7, %v747_v20, -inf }
 0x1c9   :  { %772 = vmax.xlane.f32.xlu1 %v771_v19 }
 0x1cb   :  { %769 = vmax.xlane.f32.xlu0 %v768_v21 }
 0x1ce   :  { %v2040_v0 = vpop.f32.mrf.mxu1 }
 0x1d0   :  { %v995_v1 = vpop.f32.mrf.mxu1 }
 0x246   :  { %v761_v22 = vpop.xlane.xlu1 %760 }
 0x247   :  { %v752_v23 = vpop.xlane.xlu0 %751  ;;  %v777_v26 = vsub.f32 %v744_v62, %v761_v22  ;;  %v2029_v62 = vpop.f32.mrf.mxu0 }
 0x248   :  { %v774_v24 = vsub.f32 %v741_v2, %v752_v23  ;;  %2063 = vmatprep.subr.mxu0 %v2029_v62  ;;  %v2062_v2 = vpop.f32.mrf.mxu1 }
 0x249   :  { %v788_v32 = vmul.f32 1.442695, %v777_v26  ;;  %2064 = vmatpush3.msra.mxu0 %v2029_v62  ;;  %v920_v63 = vpop.f32.mrf.mxu0  ;;  %2084 = vmatprep.subr.mxu1 %v2062_v2 }
 0x24a   :  { %v758_v25 = vpop.xlane.xlu1 %757  ;;  %v782_v27 = vmul.f32 1.442695, %v774_v24  ;;  %2065 = vmatprep.subr.mxu0 %v920_v63  ;;  %2085 = vmatpush3.msra.mxu1 %v2062_v2 }
 0x24b   :  { %v776_v28 = vsub.f32 %v743_v3, %v758_v25  ;;  %v755_v29 = vpop.xlane.xlu0 %754  ;;  %2066 = vmatpush3.msra.mxu0 %v920_v63  ;;  %v1145_v3 = vpop.f32.mrf.mxu1 }
 0x24c   :  { %2127 = vpow2.f32 %v782_v27  ;;  %v775_v31 = vsub.f32 %v742_v5, %v755_v29  ;;  %2070 = vmatprep.subr.mxu0 %v2040_v0  ;;  %2086 = vmatprep.subr.mxu1 %v1145_v3 }
 0x24d   :  { %v786_v30 = vmul.f32 1.442695, %v776_v28  ;;  %2087 = vmatpush3.msra.mxu1 %v1145_v3  ;;  %v1542_v3 = vld [vmem:[#allocation7 + $0x18] sm:$0xff] }
 0x24e   :  { %v784_v33 = vmul.f32 1.442695, %v775_v31  ;;  %v767_v34 = vpop.xlane.xlu1 %766 }
 0x24f   :  { %2129 = vpow2.f32 %v786_v30  ;;  %v779_v35 = vsub.f32 %v746_v11, %v767_v34 }
 0x250   :  { %2131 = vpow2.f32 %v784_v33  ;;  %v764_v36 = vpop.xlane.xlu0 %763 }
 0x251   :  { %v778_v37 = vsub.f32 %v745_v15, %v764_v36  ;;  %2133 = vpow2.f32 %v788_v32  ;;  %v792_v38 = vmul.f32 1.442695, %v779_v35 }
 0x252   :  { %v773_v39 = vpop.xlane.xlu1 %772 }
 0x253   :  { %v790_v40 = vmul.f32 1.442695, %v778_v37  ;;  %v781_v41 = vsub.f32 %v748_v16, %v773_v39 }
 0x254   :  { %v770_v42 = vpop.xlane.xlu0 %769 }
 0x255   :  { %2135 = vpow2.f32 %v790_v40  ;;  %v780_v43 = vsub.f32 %v747_v20, %v770_v42  ;;  %v796_v44 = vmul.f32 1.442695, %v781_v41  ;;  %v2051_v20 = vpop.f32.mrf.mxu0 }
 0x256   :  { %2137 = vpow2.f32 %v792_v38 }
 0x257   :  { %v794_v45 = vmul.f32 1.442695, %v780_v43  ;;  %v1070_v24 = vpop.f32.mrf.mxu0 }
 0x259   :  { %v2128_v46 = vpop.eup %2127  ;;  %2139 = vpow2.f32 %v794_v45 }
 0x25a   :  { %2141 = vpow2.f32 %v796_v44  ;;  %v798_v47 = vsel %vm749_vm7, %v2128_v46, 0.0 }
 0x25b   :  { %799 = vadd.xlane.f32.xlu0 %v798_v47 }
 0x25c   :  { %v2130_v48 = vpop.eup %2129 }
 0x25d   :  { %v2132_v49 = vpop.eup %2131  ;;  %v804_v51 = vsel %vm749_vm7, %v2130_v48, 0.0 }
 0x25e   :  { %v801_v50 = vsel %vm749_vm7, %v2132_v49, 0.0  ;;  %v2134_v52 = vpop.eup %2133 }
 0x25f   :  { %802 = vadd.xlane.f32.xlu1 %v801_v50  ;;  %805 = vadd.xlane.f32.xlu0 %v804_v51  ;;  %v807_v54 = vsel %vm749_vm7, %v2134_v52, 0.0 }
 0x262   :  { %v2136_v53 = vpop.eup %2135 }
 0x263   :  { %v2459_v55 = vpop.eup %2137  ;;  %808 = vadd.xlane.f32.xlu1 %v807_v54  ;;  %v810_v56 = vsel %vm749_vm7, %v2136_v53, 0.0 }
 0x264   :  { %811 = vadd.xlane.f32.xlu0 %v810_v56  ;;  %v813_v58 = vsel %vm749_vm7, %v2459_v55, 0.0 }
 0x266   :  { %v2462_v57 = vpop.eup %2139 }
 0x267   :  { %v2466_v59 = vpop.eup %2141  ;;  %814 = vadd.xlane.f32.xlu1 %v813_v58  ;;  %v816_v60 = vsel %vm749_vm7, %v2462_v57, 0.0 }
 0x268   :  { %817 = vadd.xlane.f32.xlu0 %v816_v60  ;;  %v819_v61 = vsel %vm749_vm7, %v2466_v59, 0.0 }
 0x26b   :  { %820 = vadd.xlane.f32.xlu1 %v819_v61 }
 0x2e4   :  { %v800_v4 = vpop.xlane.xlu0 %799 }
 0x2e5   :  { %2143 = vrcp.f32 %v800_v4  ;;  %v1540_v4 = vld [vmem:[#allocation7 + $0x8] sm:$0xff] }
 0x2e8   :  { %v803_v5 = vpop.xlane.xlu1 %802  ;;  %v806_v6 = vpop.xlane.xlu0 %805 }
 0x2e9   :  { %2145 = vrcp.f32 %v803_v5  ;;  %v1539_v5 = vld [vmem:[#allocation7] sm:$0xff] }
 0x2ea   :  { %2147 = vrcp.f32 %v806_v6  ;;  %v1637_v6 = vld [vmem:[%s2559_s6 + $0x38] sm:$0xff] }
 0x2eb   :  { %2102 = vmatprep.subr.mxu1 %v1637_v6 }
 0x2ec   :  { %v809_v7 = vpop.xlane.xlu1 %808 }
 0x2ed   :  { %2149 = vrcp.f32 %v809_v7  ;;  %v812_v10 = vpop.xlane.xlu0 %811  ;;  %v1636_v7 = vld [vmem:[%s2559_s6 + $0x30] sm:$0xff] }
 0x2ee   :  { %2151 = vrcp.f32 %v812_v10  ;;  %v1635_v10 = vld [vmem:[%s2559_s6 + $0x28] sm:$0xff] }
 0x2f0   :  { %v815_v11 = vpop.xlane.xlu1 %814 }
 0x2f1   :  { %2153 = vrcp.f32 %v815_v11  ;;  %v818_v12 = vpop.xlane.xlu0 %817  ;;  %v1634_v11 = vld [vmem:[%s2559_s6 + $0x20] sm:$0xff] }
 0x2f2   :  { %v2144_v13 = vpop.eup %2143  ;;  %2155 = vrcp.f32 %v818_v12 }
 0x2f3   :  { %v830_v14 = vmul.f32 %v2144_v13, %v2128_v46 }
 0x2f4   :  { %v821_v15 = vpop.xlane.xlu1 %820 }
 0x2f5   :  { %2157 = vrcp.f32 %v821_v15  ;;  %2067 = vmatprep.mubr.msk.f32.mxu0 %vm749_vm7, %v830_v14 }
 0x2f6   :  { %v2146_v16 = vpop.eup %2145 }
 0x2f7   :  { %v2148_v17 = vpop.eup %2147  ;;  %v831_v18 = vmul.f32 %v2146_v16, %v2132_v49 }
 0x2f8   :  { %v832_v19 = vmul.f32 %v2148_v17, %v2130_v48 }
 0x2f9   :  { %2068 = vmatmul.mubr.msk.f32.vlgmr.msra.gmra.mxu0 %vm749_vm7, %v831_v18 }
 0x2fa   :  { %v2150_v21 = vpop.eup %2149  ;;  %2071 = vmatpush3.msra.mxu0 %v2040_v0  ;;  %2074 = vmatprep.mubr.msk.f32.mxu0 %vm749_vm7, %v832_v19  ;;  %v1817_v19 = vld [vmem:[%s2560_s7 + $0x2] ss:$0 sm:$0xff] }
 0x2fb   :  { %v2152_v22 = vpop.eup %2151  ;;  %2072 = vmatprep.subr.mxu0 %v995_v1  ;;  %v833_v23 = vmul.f32 %v2150_v21, %v2134_v52 }
 0x2fc   :  { %2073 = vmatpush3.msra.mxu0 %v995_v1  ;;  %v834_v25 = vmul.f32 %v2152_v22, %v2136_v53 }
 0x2fd   :  { %2077 = vmatprep.subr.mxu0 %v2051_v20  ;;  %2075 = vmatmul.mubr.msk.f32.vlgmr.msra.gmra.mxu0 %vm749_vm7, %v833_v23 }
 0x2fe   :  { %v2154_v26 = vpop.eup %2153  ;;  %2078 = vmatpush3.msra.mxu0 %v2051_v20  ;;  %2081 = vmatprep.mubr.msk.f32.mxu0 %vm749_vm7, %v834_v25 }
 0x2ff   :  { %v2156_v27 = vpop.eup %2155  ;;  %2079 = vmatprep.subr.mxu0 %v1070_v24  ;;  %v835_v28 = vmul.f32 %v2154_v26, %v2459_v55 }
 0x300   :  { %2080 = vmatpush3.msra.mxu0 %v1070_v24  ;;  %v836_v29 = vmul.f32 %v2156_v27, %v2462_v57  ;;  %v1818_v24 = vld [vmem:[%s2560_s7 + $0x3] ss:$0 sm:$0xff] }
 0x301   :  { %2082 = vmatmul.mubr.msk.f32.vlgmr.msra.gmra.mxu0 %vm749_vm7, %v835_v28  ;;  %2091 = vmatprep.subr.mxu0 %v1542_v3  ;;  %v1633_v28 = vld [vmem:[%s2559_s6 + $0x18] sm:$0xff] }
 0x302   :  { %v2158_v30 = vpop.eup %2157  ;;  %2088 = vmatprep.mubr.msk.f32.mxu1 %vm749_vm7, %v836_v29  ;;  %2092 = vmatpush3.msra.mxu0 %v1542_v3  ;;  %v1632_v29 = vld [vmem:[%s2559_s6 + $0x10] sm:$0xff]  ;;  %v1826_v3 = vld [vmem:[%s2560_s7 + $0x5] ss:$0 sm:$0xff] }
 0x303   :  { %v837_v31 = vmul.f32 %v2158_v30, %v2466_v59  ;;  %v1631_v30 = vld [vmem:[%s2559_s6 + $0x8] sm:$0xff] }
 0x305   :  { %2089 = vmatmul.mubr.msk.f32.vlgmr.msra.gmra.mxu1 %vm749_vm7, %v837_v31  ;;  %v1630_v31 = vld [vmem:[%s2559_s6] sm:$0xff] }
 0x306   :  { %2103 = vmatpush3.msra.mxu1 %v1637_v6 }
 0x307   :  { %2104 = vmatprep.subr.mxu1 %v1636_v7 }
 0x308   :  { %2105 = vmatpush3.msra.mxu1 %v1636_v7 }
 0x309   :  { %2106 = vmatprep.subr.mxu1 %v1635_v10 }
 0x30a   :  { %2107 = vmatpush3.msra.mxu1 %v1635_v10 }
 0x30b   :  { %2108 = vmatprep.subr.mxu1 %v1634_v11 }
 0x30c   :  { %2109 = vmatpush3.msra.mxu1 %v1634_v11 }
 0x30d   :  { %2110 = vmatprep.subr.mxu1 %v1633_v28 }
 0x30e   :  { %2111 = vmatpush3.msra.mxu1 %v1633_v28 }
 0x30f   :  { %2112 = vmatprep.subr.mxu1 %v1632_v29 }
 0x310   :  { %2113 = vmatpush3.msra.mxu1 %v1632_v29 }
 0x311   :  { %2114 = vmatprep.subr.mxu1 %v1631_v30 }
 0x312   :  { %2115 = vmatpush3.msra.mxu1 %v1631_v30 }
 0x313   :  { %2116 = vmatprep.subr.mxu1 %v1630_v31 }
 0x314   :  { %2117 = vmatpush3.msra.mxu1 %v1630_v31 }
 0x3b9   :  { %v2069_v32 = vpop.f32.mrf.mxu0 }
 0x3ba   :  { %v1485_v38 = vsel %vm84_vm0, %v2069_v32, 0.0  ;;  %v1819_v32 = vld [vmem:[%s2560_s7] ss:$0 sm:$0xff] }
 0x3bb   :  { %v1226_v33 = vpop.f32.mrf.mxu0 }
 0x3bc   :  { %v1478_v43 = vsel %vm84_vm0, %v1226_v33, 0.0 }
 0x3bd   :  { %v2076_v34 = vpop.f32.mrf.mxu0 }
 0x3be   :  { %v1486_v36 = vsel %vm84_vm0, %v2076_v34, 0.0 }
 0x3bf   :  { %v1307_v35 = vpop.f32.mrf.mxu0  ;;  %v1487_v41 = vadd.f32 %v1486_v36, %v1485_v38 }
 0x3c0   :  { %v1479_v39 = vsel %vm84_vm0, %v1307_v35, 0.0 }
 0x3c1   :  { %v2083_v37 = vpop.f32.mrf.mxu0  ;;  %v1480_v45 = vadd.f32 %v1479_v39, %v1478_v43  ;;  %v1822_v39 = vld [vmem:[%s2560_s7 + $0x1] ss:$0 sm:$0xff] }
 0x3c2   :  { %v1488_v40 = vsel %vm84_vm0, %v2083_v37, 0.0 }
 0x3c3   :  { %v1388_v42 = vpop.f32.mrf.mxu0  ;;  %v1489_v46 = vadd.f32 %v1488_v40, %v1487_v41 }
 0x3c4   :  { %v1481_v44 = vsel %vm84_vm0, %v1388_v42, 0.0 }
 0x3c5   :  { %v2090_v47 = vpop.f32.mrf.mxu1  ;;  %v1482_v49 = vadd.f32 %v1481_v44, %v1480_v45 }
 0x3c6   :  { %v1490_v48 = vsel %vm84_vm0, %v2090_v47, 0.0 }
 0x3c7   :  { %v1491_v50 = vadd.f32 %v1490_v48, %v1489_v46  ;;  %v1469_v51 = vpop.f32.mrf.mxu1 }
 0x3c8   :  { %v1483_v52 = vsel %vm84_vm0, %v1469_v51, 0.0 }
 0x3c9   :  { %v1484_v53 = vadd.f32 %v1483_v52, %v1482_v49  ;;  %v1499_v54 = vadd.f32 %v1491_v50, %v2345_v9 }
 0x3cb   :  { %v1503_v55 = vsel %vm84_vm0, %v1499_v54, 0.0  ;;  %v1498_v56 = vadd.f32 %v1484_v53, %v2340_v8  ;;  %v1541_v8 = vld [vmem:[#allocation7 + $0x10] sm:$0xff] }
 0x3cc   :  { %1504 = vadd.xlane.f32.xlu1 %v1503_v55  ;;  %2093 = vmatprep.subr.mxu0 %v1541_v8 }
 0x3cd   :  { %v1500_v57 = vsel %vm84_vm0, %v1498_v56, 0.0  ;;  %2094 = vmatpush3.msra.mxu0 %v1541_v8 }
 0x3ce   :  { %1501 = vadd.xlane.f32.xlu0 %v1500_v57  ;;  %2095 = vmatprep.subr.mxu0 %v1540_v4 }
 0x3cf   :  { %2096 = vmatpush3.msra.mxu0 %v1540_v4 }
 0x3d0   :  { %2097 = vmatprep.subr.mxu0 %v1539_v5 }
 0x3d1   :  { %2098 = vmatpush3.msra.mxu0 %v1539_v5 }
 0x455   :  { %v1505_v58 = vpop.xlane.xlu1 %1504 }
 0x456   :  { %v1508_v59 = vmul.f32 0.03125, %v1505_v58 }
 0x457   :  { %v1502_v60 = vpop.xlane.xlu0 %1501 }
 0x458   :  { %v1510_v61 = vsub.f32 %v1499_v54, %v1508_v59  ;;  %v1507_v62 = vmul.f32 0.03125, %v1502_v60 }
 0x45a   :  { %v1509_v63 = vsub.f32 %v1498_v56, %v1507_v62  ;;  %v1512_v0 = vmul.f32 %v1510_v61, %v1510_v61 }
 0x45c   :  { %v1516_v1 = vsel %vm84_vm0, %v1512_v0, 0.0  ;;  %v1511_v2 = vmul.f32 %v1509_v63, %v1509_v63 }
 0x45d   :  { %1517 = vadd.xlane.f32.xlu1 %v1516_v1  ;;  %v1825_v1 = vld [vmem:[%s2560_s7 + $0x4] ss:$0 sm:$0xff] }
 0x45e   :  { %v1513_v9 = vsel %vm84_vm0, %v1511_v2, 0.0 }
 0x45f   :  { %1514 = vadd.xlane.f32.xlu0 %v1513_v9 }
 0x4e6   :  { %v1518_v12 = vpop.xlane.xlu1 %1517 }
 0x4e7   :  { %v1520_v13 = vmul.f32 0.03125, %v1518_v12 }
 0x4e8   :  { %v1515_v14 = vpop.xlane.xlu0 %1514 }
 0x4e9   :  { %v1522_v15 = vadd.f32 1e-05, %v1520_v13  ;;  %v1519_v16 = vmul.f32 0.03125, %v1515_v14 }
 0x4eb   :  { %2159 = vrsqrt.f32 %v1522_v15  ;;  %v1521_v17 = vadd.f32 1e-05, %v1519_v16 }
 0x4ed   :  { %2161 = vrsqrt.f32 %v1521_v17 }
 0x4f8   :  { %v2160_v18 = vpop.eup %2159 }
 0x4f9   :  { %v1526_v20 = vmul.f32 %v2160_v18, %v1510_v61 }
 0x4fa   :  { %v2162_v21 = vpop.eup %2161 }
 0x4fb   :  { %v1525_v22 = vmul.f32 %v2162_v21, %v1509_v63  ;;  %v1532_v23 = vmul.f32 %v1817_v19, %v1526_v20 }
 0x4fd   :  { %v1531_v25 = vmul.f32 %v1817_v19, %v1525_v22  ;;  %v1538_v27 = vadd.f32 %v1818_v24, %v1532_v23 }
 0x4ff   :  { %v1537_v26 = vadd.f32 %v1818_v24, %v1531_v25 }
 0x501   :  { %2099 = vmatprep.mubr.msk.f32.mxu0 %vm84_vm0, %v1537_v26 }
 0x502   :  { %2100 = vmatmul.mubr.msk.f32.vlgmr.msra.gmra.mxu0 %vm84_vm0, %v1538_v27 }
 0x5c2   :  { %v2101_v33 = vpop.f32.mrf.mxu0 }
 0x5c3   :  { %v1625_v34 = vadd.f32 %v2101_v33, %v1819_v32 }
 0x5c4   :  { %v1619_v35 = vpop.f32.mrf.mxu0 }
 0x5c5   :  { %v1620_v36 = vadd.f32 %v1819_v32, %v1619_v35  ;;  %v1629_v38 = vmax.f32 %v1625_v34, 0.0 }
 0x5c7   :  { %v1628_v37 = vmax.f32 %v1620_v36, 0.0 }
 0x5c9   :  { %2118 = vmatprep.mubr.msk.f32.mxu1 %vm1642_vm9, %v1628_v37 }
 0x5ca   :  { %2119 = vmatmul.mubr.msk.f32.vlgmr.msra.gmra.mxu1 %vm1642_vm9, %v1629_v38 }
 0x68a   :  { %v2120_v40 = vpop.f32.mrf.mxu1 }
 0x68b   :  { %v1721_v41 = vadd.f32 %v2120_v40, %v1822_v39 }
 0x68c   :  { %v1715_v42 = vpop.f32.mrf.mxu1 }
 0x68d   :  { %v1716_v43 = vadd.f32 %v1822_v39, %v1715_v42  ;;  %v1725_v44 = vadd.f32 %v1721_v41, %v1538_v27 }
 0x68f   :  { %v1729_v45 = vsel %vm84_vm0, %v1725_v44, 0.0  ;;  %v1724_v46 = vadd.f32 %v1716_v43, %v1537_v26 }
 0x690   :  { %1730 = vadd.xlane.f32.xlu1 %v1729_v45 }
 0x691   :  { %v1726_v47 = vsel %vm84_vm0, %v1724_v46, 0.0 }
 0x692   :  { %1727 = vadd.xlane.f32.xlu0 %v1726_v47 }
 0x719   :  { %v1731_v48 = vpop.xlane.xlu1 %1730 }
 0x71a   :  { %v1733_v49 = vmul.f32 0.03125, %v1731_v48 }
 0x71b   :  { %v1728_v50 = vpop.xlane.xlu0 %1727 }
 0x71c   :  { %v1735_v51 = vsub.f32 %v1725_v44, %v1733_v49  ;;  %v1732_v52 = vmul.f32 0.03125, %v1728_v50 }
 0x71e   :  { %v1734_v53 = vsub.f32 %v1724_v46, %v1732_v52  ;;  %v1737_v54 = vmul.f32 %v1735_v51, %v1735_v51 }
 0x720   :  { %v1741_v55 = vsel %vm84_vm0, %v1737_v54, 0.0  ;;  %v1736_v56 = vmul.f32 %v1734_v53, %v1734_v53 }
 0x721   :  { %1742 = vadd.xlane.f32.xlu1 %v1741_v55 }
 0x722   :  { %v1738_v57 = vsel %vm84_vm0, %v1736_v56, 0.0 }
 0x723   :  { %1739 = vadd.xlane.f32.xlu0 %v1738_v57 }
 0x7aa   :  { %v1743_v58 = vpop.xlane.xlu1 %1742 }
 0x7ab   :  { %v1745_v59 = vmul.f32 0.03125, %v1743_v58 }
 0x7ac   :  { %v1740_v60 = vpop.xlane.xlu0 %1739 }
 0x7ad   :  { %v1747_v61 = vadd.f32 1e-05, %v1745_v59  ;;  %v1744_v62 = vmul.f32 0.03125, %v1740_v60 }
 0x7af   :  { %2163 = vrsqrt.f32 %v1747_v61  ;;  %v1746_v63 = vadd.f32 1e-05, %v1744_v62 }
 0x7b1   :  { %2165 = vrsqrt.f32 %v1746_v63 }
 0x7bc   :  { %v2164_v0 = vpop.eup %2163 }
 0x7bd   :  { %v1751_v2 = vmul.f32 %v2164_v0, %v1735_v51 }
 0x7be   :  { %v2166_v9 = vpop.eup %2165 }
 0x7bf   :  { %v1750_v8 = vmul.f32 %v2166_v9, %v1734_v53  ;;  %v1757_v4 = vmul.f32 %v1825_v1, %v1751_v2 }
 0x7c1   :  { %v1756_v5 = vmul.f32 %v1825_v1, %v1750_v8  ;;  %v1763_v6 = vadd.f32 %v1826_v3, %v1757_v4 }
 0x7c3   :  { %v1762_v7 = vadd.f32 %v1826_v3, %v1756_v5  ;;  %1765 = vst.msk [vmem:[#allocation9 + $0x8] sm:$0xff] %vm84_vm0, %v1763_v6 }
 0x7c5   :  { %1764 = vst.msk [vmem:[#allocation9] sm:$0xff] %vm84_vm0, %v1762_v7 }
 0x7c6   :  { %2230 = shalt.err (!%p2227_p5)
}
 0x7c7   :  { %1777 = dma.vmem_to_hbm [thread:$0]  %s1772_s20, 256, %s2561_s8, [#allocation6], %s2249_s12, %s2249_s12, %s2250_s13  }
 0x7c8   :  { %2245 = dma.done.wait [#allocation6], 256  }
 0x7c9   :  { %2246 = vsyncadd [#allocation6], 4294967040 }
 0x7ca   :  { %1781 = vsyncpa [#allocation5], 1 }
 0x7cb   :  { %1782 = vsyncpa [#allocation8], 1 }
 0x7cc   :  { %1783 = vsyncpa [#allocation6], 1 }

</bundles_post_ra>
